<compile_context>
chip_gen: v5e
topology: v5e:2x2
jax: 0.10.0
libtpu: 0.0.40
codegen_flags: <defaults>
</compile_context>

<pallas_src>
import math
import functools

import jax
import jax.numpy as jnp
from jax.experimental import pallas as pl
from jax.experimental.pallas import tpu as pltpu


# ----------------------------------------------------------------------------
# Fused kernel: encoder MLP -> mean over set -> output MLP, one batch block.
# ----------------------------------------------------------------------------
def _deepsets_kernel(x_ref, *refs, n_encode, n_out, inv_n):
    elem_ref, set_ref = refs[-2], refs[-1]          # outputs
    wb = refs[:-2]                                  # interleaved (w, b) refs

    Bb, N, Din = x_ref.shape

    def linear_relu(a, w_ref, b_ref):
        w = w_ref[...]                              # already bf16 if requested
        a = a.astype(w.dtype)                       # activation-only cast (no-op in f32)
        y = jnp.dot(a, w, preferred_element_type=jnp.float32) + b_ref[...]
        return jnp.maximum(y, 0.0)                  # bias/ReLU stay f32 on the VPU

    # ---- encoder: one tall MXU matmul over all Bb*N set elements -----------
    # N is a multiple of 8, so this reshape is a free logical regrouping.
    h = x_ref[...].reshape(Bb * N, Din)
    idx = 0
    for _ in range(n_encode):
        h = linear_relu(h, wb[idx], wb[idx + 1])
        idx += 2
    Dout = h.shape[-1]

    E = h.reshape(Bb, N, Dout)                      # element embeddings (f32)
    elem_ref[...] = E.astype(elem_ref.dtype)        # cast only at the store

    # ---- mean over the set dimension: multiply by 1/N (no divide) ----------
    s = jnp.sum(E, axis=1) * inv_n                  # (Bb, Dout), f32

    # ---- output head: runs over the whole batch block at once --------------
    for _ in range(n_out):
        s = linear_relu(s, wb[idx], wb[idx + 1])
        idx += 2

    set_ref[...] = s.astype(set_ref.dtype)          # lane-dense 2-D store


# ----------------------------------------------------------------------------
# Spec helpers.
# ----------------------------------------------------------------------------
def _const_block_spec(shape):
    """Constant-index (fetched-once) weight/bias spec; single-buffered when the
    installed JAX supports pipeline_mode, otherwise default double-buffered."""
    index_map = lambda i: (0,) * len(shape)
    if hasattr(pl, "Buffered"):
        try:
            return pl.BlockSpec(shape, index_map, pipeline_mode=pl.Buffered(1))
        except TypeError:
            pass
    return pl.BlockSpec(shape, index_map)


def _pick_block_b(B, N, per_b_bytes, weight_bytes, *, target_rows=1024,
                  vmem_budget=40 << 20):
    """Batch elements per grid step.

    Aim for >= target_rows encoder-matmul rows (block_b * N), capped by a VMEM
    budget (X block + elem block + set block double-buffered + weights).  No
    artificial ">=2 grid steps" shrinking: for small batches the whole batch
    runs in one step so the output head sees all B pooled rows at once.
    """
    want = max(1, -(-target_rows // N))                       # ceil division
    fit = max(1, (vmem_budget - 2 * weight_bytes) // max(per_b_bytes, 1))
    bb = int(max(1, min(B, want, fit)))
    cand = [d for d in range(1, bb + 1) if B % d == 0]
    # Prefer full batch or a multiple of 8 (keeps the 2-D set-output block
    # sublane-aligned when sub-batching).
    pref = [d for d in cand if d == B or d % 8 == 0]
    return max(pref) if pref else max(cand)


# ----------------------------------------------------------------------------
# Wrapper: one fused pallas_call for the full DeepSets forward.
# ----------------------------------------------------------------------------
def deepsets_forward(X, encode_params, out_params, *, block_b=None,
                     use_bf16_matmul=False, elem_dtype=jnp.float32,
                     set_dtype=jnp.float32, target_rows=1024,
                     vmem_budget_bytes=40 << 20):
    B, N, in_dim = X.shape
    out_dim = encode_params[-1][0].shape[1]
    all_params = list(encode_params) + list(out_params)

    # MXU operands pre-cast in the wrapper (weights + X); biases stay f32 so
    # the in-kernel bias add / ReLU / mean remain f32 VPU math.
    mxu_dtype = jnp.bfloat16 if use_bf16_matmul else jnp.float32
    Xk = X.astype(mxu_dtype)

    flat_params = []
    weight_bytes = 0
    for w, b in all_params:
        wk = w.astype(mxu_dtype)
        bk = b.astype(jnp.float32)
        flat_params += [wk, bk]
        weight_bytes += wk.nbytes + bk.nbytes

    x_item = jnp.dtype(mxu_dtype).itemsize
    elem_item = jnp.dtype(elem_dtype).itemsize
    set_item = jnp.dtype(set_dtype).itemsize
    # Double-buffered per-batch-element VMEM footprint (X block + elem + set).
    per_b_bytes = 2 * (N * in_dim * x_item + N * out_dim * elem_item
                       + out_dim * set_item)

    if block_b is None:
        block_b = _pick_block_b(B, N, per_b_bytes, weight_bytes,
                                target_rows=target_rows,
                                vmem_budget=vmem_budget_bytes)
    assert B % block_b == 0, "batch must be divisible by the batch block"

    in_specs = [pl.BlockSpec((block_b, N, in_dim), lambda i: (i, 0, 0))]
    for w, b in all_params:
        in_specs += [_const_block_spec(w.shape), _const_block_spec(b.shape)]

    # Advisory cost estimate so XLA schedules the fused call sensibly.
    flops = (2 * B * N * sum(w.shape[0] * w.shape[1] for w, _ in encode_params)
             + 2 * B * sum(w.shape[0] * w.shape[1] for w, _ in out_params))
    bytes_accessed = (Xk.nbytes + weight_bytes
                      + B * N * out_dim * elem_item + B * out_dim * set_item)

    # Only raise the scoped VMEM limit when the footprint actually needs it.
    vmem_est = 2 * weight_bytes + block_b * per_b_bytes
    vmem_limit = None
    if vmem_est > (24 << 20):
        vmem_limit = int(min(vmem_est + (8 << 20), 56 << 20))

    kernel = functools.partial(
        _deepsets_kernel,
        n_encode=len(encode_params), n_out=len(out_params), inv_n=1.0 / N)

    elem, set_emb = pl.pallas_call(
        kernel,
        out_shape=(
            jax.ShapeDtypeStruct((B, N, out_dim), elem_dtype),   # element emb
            jax.ShapeDtypeStruct((B, out_dim), set_dtype),       # set emb (2-D)
        ),
        grid=(B // block_b,),
        in_specs=in_specs,
        out_specs=(
            pl.BlockSpec((block_b, N, out_dim), lambda i: (i, 0, 0)),
            pl.BlockSpec((block_b, out_dim), lambda i: (i, 0)),
        ),
        compiler_params=pltpu.CompilerParams(
            dimension_semantics=("parallel",),
            vmem_limit_bytes=vmem_limit),
        cost_estimate=pl.CostEstimate(flops=int(flops), transcendentals=0,
                                      bytes_accessed=int(bytes_accessed)),
    )(Xk, *flat_params)

    return set_emb, elem                            # matches PyTorch return order


# ----------------------------------------------------------------------------
# Pure-JAX reference (mirrors the PyTorch module exactly).
# ----------------------------------------------------------------------------
def _deepsets_ref(X, encode_params, out_params):
    h = X
    for w, b in encode_params:
        h = jax.nn.relu(h @ w + b)
    element_embedding = h
    s = element_embedding.mean(axis=-2)
    for w, b in out_params:
        s = jax.nn.relu(s @ w + b)
    return s, element_embedding


# ----------------------------------------------------------------------------
# Deterministic parameter construction (PyTorch nn.Linear default init).
# ----------------------------------------------------------------------------
def _make_linear(key, d_in, d_out):
    kw, kb = jax.random.split(key)
    lim = 1.0 / math.sqrt(d_in)
    w = jax.random.uniform(kw, (d_in, d_out), jnp.float32, -lim, lim)
    b = jax.random.uniform(kb, (1, d_out), jnp.float32, -lim, lim)
    return w, b


def _make_mlp_params(key, layer_dims):
    keys = jax.random.split(key, len(layer_dims))
    return [_make_linear(k, di, do) for k, (di, do) in zip(keys, layer_dims)]


if __name__ == "__main__":
    # Small DeepSets config: in_dim=4, hidden=32, out_dim=32, set of 16, batch 2.
    B, N = 2, 16
    in_dim, hidden, out_dim = 4, 32, 32

    root = jax.random.PRNGKey(0)
    k_x, k_enc, k_out = jax.random.split(root, 3)

    X = jax.random.normal(k_x, (B, N, in_dim), jnp.float32)

    encode_dims = [(in_dim, hidden), (hidden, hidden), (hidden, hidden),
                   (hidden, 2 * hidden), (2 * hidden, 2 * hidden),
                   (2 * hidden, 2 * hidden), (2 * hidden, out_dim)]
    out_dims = [(out_dim, hidden), (hidden, 2 * hidden),
                (2 * hidden, hidden), (hidden, out_dim)]

    encode_params = _make_mlp_params(k_enc, encode_dims)
    out_params = _make_mlp_params(k_out, out_dims)

    # --- exact-semantics f32 path (matches the PyTorch module) --------------
    set_emb, elem_emb = deepsets_forward(X, encode_params, out_params)
    jax.block_until_ready((set_emb, elem_emb))

    set_ref, elem_ref = _deepsets_ref(X, encode_params, out_params)
    assert set_emb.shape == (B, out_dim)
    assert elem_emb.shape == (B, N, out_dim)
    assert jnp.allclose(elem_emb, elem_ref, atol=1e-3, rtol=1e-3), \
        "element_embedding mismatch vs reference"
    assert jnp.allclose(set_emb, set_ref, atol=1e-3, rtol=1e-3), \
        "set_embedding mismatch vs reference"

    # --- production-style bf16 MXU-operand path (v6e/v7x), bf16 elem output -
    # Weights pre-cast in the wrapper; bias/ReLU/mean still f32.  bf16 drift is
    # expected to exceed the tight f32 tolerance, so only shape/finiteness is
    # asserted here.
    set_bf, elem_bf = deepsets_forward(X, encode_params, out_params,
                                       use_bf16_matmul=True,
                                       elem_dtype=jnp.bfloat16)
    jax.block_until_ready((set_bf, elem_bf))
    assert set_bf.shape == (B, out_dim)
    assert elem_bf.shape == (B, N, out_dim) and elem_bf.dtype == jnp.bfloat16
    assert bool(jnp.all(jnp.isfinite(set_bf.astype(jnp.float32))))
    assert bool(jnp.all(jnp.isfinite(elem_bf.astype(jnp.float32))))

    print("KERNEL_OK")
</pallas_src>

<mosaic_0001>
module attributes {stable_mosaic.version = 11 : i64} {
  func.func @_deepsets_kernel(%arg0: i32, %arg1: memref<2x16x4xf32, #tpu.memory_space<vmem>>, %arg2: memref<4x32xf32, #tpu.memory_space<vmem>>, %arg3: memref<1x32xf32, #tpu.memory_space<vmem>>, %arg4: memref<32x32xf32, #tpu.memory_space<vmem>>, %arg5: memref<1x32xf32, #tpu.memory_space<vmem>>, %arg6: memref<32x32xf32, #tpu.memory_space<vmem>>, %arg7: memref<1x32xf32, #tpu.memory_space<vmem>>, %arg8: memref<32x64xf32, #tpu.memory_space<vmem>>, %arg9: memref<1x64xf32, #tpu.memory_space<vmem>>, %arg10: memref<64x64xf32, #tpu.memory_space<vmem>>, %arg11: memref<1x64xf32, #tpu.memory_space<vmem>>, %arg12: memref<64x64xf32, #tpu.memory_space<vmem>>, %arg13: memref<1x64xf32, #tpu.memory_space<vmem>>, %arg14: memref<64x32xf32, #tpu.memory_space<vmem>>, %arg15: memref<1x32xf32, #tpu.memory_space<vmem>>, %arg16: memref<32x32xf32, #tpu.memory_space<vmem>>, %arg17: memref<1x32xf32, #tpu.memory_space<vmem>>, %arg18: memref<32x64xf32, #tpu.memory_space<vmem>>, %arg19: memref<1x64xf32, #tpu.memory_space<vmem>>, %arg20: memref<64x32xf32, #tpu.memory_space<vmem>>, %arg21: memref<1x32xf32, #tpu.memory_space<vmem>>, %arg22: memref<32x32xf32, #tpu.memory_space<vmem>>, %arg23: memref<1x32xf32, #tpu.memory_space<vmem>>, %arg24: memref<2x16x32xf32, #tpu.memory_space<vmem>>, %arg25: memref<2x32xf32, #tpu.memory_space<vmem>>) attributes {dimension_semantics = [#tpu.dimension_semantics<parallel>], iteration_bounds = array<i64: 1>, scalar_prefetch = 0 : i64, scratch_operands = 0 : i64, tpu.core_type = #tpu.core_type<tc>, window_params = [{transform_indices = @transform_0, window_bounds = array<i64: 2, 16, 4>}, {pipeline_mode = #tpu.pipeline_mode<synchronous>, transform_indices = @transform_1, window_bounds = array<i64: 4, 32>}, {pipeline_mode = #tpu.pipeline_mode<synchronous>, transform_indices = @transform_2, window_bounds = array<i64: 1, 32>}, {pipeline_mode = #tpu.pipeline_mode<synchronous>, transform_indices = @transform_3, window_bounds = array<i64: 32, 32>}, {pipeline_mode = #tpu.pipeline_mode<synchronous>, transform_indices = @transform_4, window_bounds = array<i64: 1, 32>}, {pipeline_mode = #tpu.pipeline_mode<synchronous>, transform_indices = @transform_5, window_bounds = array<i64: 32, 32>}, {pipeline_mode = #tpu.pipeline_mode<synchronous>, transform_indices = @transform_6, window_bounds = array<i64: 1, 32>}, {pipeline_mode = #tpu.pipeline_mode<synchronous>, transform_indices = @transform_7, window_bounds = array<i64: 32, 64>}, {pipeline_mode = #tpu.pipeline_mode<synchronous>, transform_indices = @transform_8, window_bounds = array<i64: 1, 64>}, {pipeline_mode = #tpu.pipeline_mode<synchronous>, transform_indices = @transform_9, window_bounds = array<i64: 64, 64>}, {pipeline_mode = #tpu.pipeline_mode<synchronous>, transform_indices = @transform_10, window_bounds = array<i64: 1, 64>}, {pipeline_mode = #tpu.pipeline_mode<synchronous>, transform_indices = @transform_11, window_bounds = array<i64: 64, 64>}, {pipeline_mode = #tpu.pipeline_mode<synchronous>, transform_indices = @transform_12, window_bounds = array<i64: 1, 64>}, {pipeline_mode = #tpu.pipeline_mode<synchronous>, transform_indices = @transform_13, window_bounds = array<i64: 64, 32>}, {pipeline_mode = #tpu.pipeline_mode<synchronous>, transform_indices = @transform_14, window_bounds = array<i64: 1, 32>}, {pipeline_mode = #tpu.pipeline_mode<synchronous>, transform_indices = @transform_15, window_bounds = array<i64: 32, 32>}, {pipeline_mode = #tpu.pipeline_mode<synchronous>, transform_indices = @transform_16, window_bounds = array<i64: 1, 32>}, {pipeline_mode = #tpu.pipeline_mode<synchronous>, transform_indices = @transform_17, window_bounds = array<i64: 32, 64>}, {pipeline_mode = #tpu.pipeline_mode<synchronous>, transform_indices = @transform_18, window_bounds = array<i64: 1, 64>}, {pipeline_mode = #tpu.pipeline_mode<synchronous>, transform_indices = @transform_19, window_bounds = array<i64: 64, 32>}, {pipeline_mode = #tpu.pipeline_mode<synchronous>, transform_indices = @transform_20, window_bounds = array<i64: 1, 32>}, {pipeline_mode = #tpu.pipeline_mode<synchronous>, transform_indices = @transform_21, window_bounds = array<i64: 32, 32>}, {pipeline_mode = #tpu.pipeline_mode<synchronous>, transform_indices = @transform_22, window_bounds = array<i64: 1, 32>}, {transform_indices = @transform_23, window_bounds = array<i64: 2, 16, 32>}, {transform_indices = @transform_24, window_bounds = array<i64: 2, 32>}]} {
    %c0 = arith.constant 0 : index
    %c0_0 = arith.constant 0 : index
    %c0_1 = arith.constant 0 : index
    %0 = vector.load %arg1[%c0, %c0_0, %c0_1] : memref<2x16x4xf32, #tpu.memory_space<vmem>>, vector<2x16x4xf32>
    %1 = vector.shape_cast %0 : vector<2x16x4xf32> to vector<32x4xf32>
    %c0_2 = arith.constant 0 : index
    %c0_3 = arith.constant 0 : index
    %2 = vector.load %arg2[%c0_2, %c0_3] : memref<4x32xf32, #tpu.memory_space<vmem>>, vector<4x32xf32>
    %cst = arith.constant dense<0.000000e+00> : vector<32x32xf32>
    %3 = tpu.matmul %1, %2, %cst {dimension_numbers = #tpu.dot_dimension_numbers<[1], [0], [0], [1], [0, 0, 1, 1], [], []>} : vector<32x4xf32>, vector<4x32xf32>, vector<32x32xf32> -> vector<32x32xf32>
    %c0_4 = arith.constant 0 : index
    %c0_5 = arith.constant 0 : index
    %4 = vector.load %arg3[%c0_4, %c0_5] : memref<1x32xf32, #tpu.memory_space<vmem>>, vector<1x32xf32>
    %5 = vector.broadcast %4 : vector<1x32xf32> to vector<32x32xf32>
    %6 = arith.addf %3, %5 : vector<32x32xf32>
    %cst_6 = arith.constant 0.000000e+00 : f32
    %7 = vector.broadcast %cst_6 : f32 to vector<32x32xf32>
    %8 = arith.maximumf %6, %7 : vector<32x32xf32>
    %c0_7 = arith.constant 0 : index
    %c0_8 = arith.constant 0 : index
    %9 = vector.load %arg4[%c0_7, %c0_8] : memref<32x32xf32, #tpu.memory_space<vmem>>, vector<32x32xf32>
    %cst_9 = arith.constant dense<0.000000e+00> : vector<32x32xf32>
    %10 = tpu.matmul %8, %9, %cst_9 {dimension_numbers = #tpu.dot_dimension_numbers<[1], [0], [0], [1], [0, 0, 1, 1], [], []>} : vector<32x32xf32>, vector<32x32xf32>, vector<32x32xf32> -> vector<32x32xf32>
    %c0_10 = arith.constant 0 : index
    %c0_11 = arith.constant 0 : index
    %11 = vector.load %arg5[%c0_10, %c0_11] : memref<1x32xf32, #tpu.memory_space<vmem>>, vector<1x32xf32>
    %12 = vector.broadcast %11 : vector<1x32xf32> to vector<32x32xf32>
    %13 = arith.addf %10, %12 : vector<32x32xf32>
    %cst_12 = arith.constant 0.000000e+00 : f32
    %14 = vector.broadcast %cst_12 : f32 to vector<32x32xf32>
    %15 = arith.maximumf %13, %14 : vector<32x32xf32>
    %c0_13 = arith.constant 0 : index
    %c0_14 = arith.constant 0 : index
    %16 = vector.load %arg6[%c0_13, %c0_14] : memref<32x32xf32, #tpu.memory_space<vmem>>, vector<32x32xf32>
    %cst_15 = arith.constant dense<0.000000e+00> : vector<32x32xf32>
    %17 = tpu.matmul %15, %16, %cst_15 {dimension_numbers = #tpu.dot_dimension_numbers<[1], [0], [0], [1], [0, 0, 1, 1], [], []>} : vector<32x32xf32>, vector<32x32xf32>, vector<32x32xf32> -> vector<32x32xf32>
    %c0_16 = arith.constant 0 : index
    %c0_17 = arith.constant 0 : index
    %18 = vector.load %arg7[%c0_16, %c0_17] : memref<1x32xf32, #tpu.memory_space<vmem>>, vector<1x32xf32>
    %19 = vector.broadcast %18 : vector<1x32xf32> to vector<32x32xf32>
    %20 = arith.addf %17, %19 : vector<32x32xf32>
    %cst_18 = arith.constant 0.000000e+00 : f32
    %21 = vector.broadcast %cst_18 : f32 to vector<32x32xf32>
    %22 = arith.maximumf %20, %21 : vector<32x32xf32>
    %c0_19 = arith.constant 0 : index
    %c0_20 = arith.constant 0 : index
    %23 = vector.load %arg8[%c0_19, %c0_20] : memref<32x64xf32, #tpu.memory_space<vmem>>, vector<32x64xf32>
    %cst_21 = arith.constant dense<0.000000e+00> : vector<32x64xf32>
    %24 = tpu.matmul %22, %23, %cst_21 {dimension_numbers = #tpu.dot_dimension_numbers<[1], [0], [0], [1], [0, 0, 1, 1], [], []>} : vector<32x32xf32>, vector<32x64xf32>, vector<32x64xf32> -> vector<32x64xf32>
    %c0_22 = arith.constant 0 : index
    %c0_23 = arith.constant 0 : index
    %25 = vector.load %arg9[%c0_22, %c0_23] : memref<1x64xf32, #tpu.memory_space<vmem>>, vector<1x64xf32>
    %26 = vector.broadcast %25 : vector<1x64xf32> to vector<32x64xf32>
    %27 = arith.addf %24, %26 : vector<32x64xf32>
    %cst_24 = arith.constant 0.000000e+00 : f32
    %28 = vector.broadcast %cst_24 : f32 to vector<32x64xf32>
    %29 = arith.maximumf %27, %28 : vector<32x64xf32>
    %c0_25 = arith.constant 0 : index
    %c0_26 = arith.constant 0 : index
    %30 = vector.load %arg10[%c0_25, %c0_26] : memref<64x64xf32, #tpu.memory_space<vmem>>, vector<64x64xf32>
    %cst_27 = arith.constant dense<0.000000e+00> : vector<32x64xf32>
    %31 = tpu.matmul %29, %30, %cst_27 {dimension_numbers = #tpu.dot_dimension_numbers<[1], [0], [0], [1], [0, 0, 1, 1], [], []>} : vector<32x64xf32>, vector<64x64xf32>, vector<32x64xf32> -> vector<32x64xf32>
    %c0_28 = arith.constant 0 : index
    %c0_29 = arith.constant 0 : index
    %32 = vector.load %arg11[%c0_28, %c0_29] : memref<1x64xf32, #tpu.memory_space<vmem>>, vector<1x64xf32>
    %33 = vector.broadcast %32 : vector<1x64xf32> to vector<32x64xf32>
    %34 = arith.addf %31, %33 : vector<32x64xf32>
    %cst_30 = arith.constant 0.000000e+00 : f32
    %35 = vector.broadcast %cst_30 : f32 to vector<32x64xf32>
    %36 = arith.maximumf %34, %35 : vector<32x64xf32>
    %c0_31 = arith.constant 0 : index
    %c0_32 = arith.constant 0 : index
    %37 = vector.load %arg12[%c0_31, %c0_32] : memref<64x64xf32, #tpu.memory_space<vmem>>, vector<64x64xf32>
    %cst_33 = arith.constant dense<0.000000e+00> : vector<32x64xf32>
    %38 = tpu.matmul %36, %37, %cst_33 {dimension_numbers = #tpu.dot_dimension_numbers<[1], [0], [0], [1], [0, 0, 1, 1], [], []>} : vector<32x64xf32>, vector<64x64xf32>, vector<32x64xf32> -> vector<32x64xf32>
    %c0_34 = arith.constant 0 : index
    %c0_35 = arith.constant 0 : index
    %39 = vector.load %arg13[%c0_34, %c0_35] : memref<1x64xf32, #tpu.memory_space<vmem>>, vector<1x64xf32>
    %40 = vector.broadcast %39 : vector<1x64xf32> to vector<32x64xf32>
    %41 = arith.addf %38, %40 : vector<32x64xf32>
    %cst_36 = arith.constant 0.000000e+00 : f32
    %42 = vector.broadcast %cst_36 : f32 to vector<32x64xf32>
    %43 = arith.maximumf %41, %42 : vector<32x64xf32>
    %c0_37 = arith.constant 0 : index
    %c0_38 = arith.constant 0 : index
    %44 = vector.load %arg14[%c0_37, %c0_38] : memref<64x32xf32, #tpu.memory_space<vmem>>, vector<64x32xf32>
    %cst_39 = arith.constant dense<0.000000e+00> : vector<32x32xf32>
    %45 = tpu.matmul %43, %44, %cst_39 {dimension_numbers = #tpu.dot_dimension_numbers<[1], [0], [0], [1], [0, 0, 1, 1], [], []>} : vector<32x64xf32>, vector<64x32xf32>, vector<32x32xf32> -> vector<32x32xf32>
    %c0_40 = arith.constant 0 : index
    %c0_41 = arith.constant 0 : index
    %46 = vector.load %arg15[%c0_40, %c0_41] : memref<1x32xf32, #tpu.memory_space<vmem>>, vector<1x32xf32>
    %47 = vector.broadcast %46 : vector<1x32xf32> to vector<32x32xf32>
    %48 = arith.addf %45, %47 : vector<32x32xf32>
    %cst_42 = arith.constant 0.000000e+00 : f32
    %49 = vector.broadcast %cst_42 : f32 to vector<32x32xf32>
    %50 = arith.maximumf %48, %49 : vector<32x32xf32>
    %51 = vector.shape_cast %50 : vector<32x32xf32> to vector<2x16x32xf32>
    %c0_43 = arith.constant 0 : index
    %c0_44 = arith.constant 0 : index
    %c0_45 = arith.constant 0 : index
    %52 = vector.load %arg24[%c0_43, %c0_44, %c0_45] : memref<2x16x32xf32, #tpu.memory_space<vmem>>, vector<2x16x32xf32>
    tpu.vector_store %arg24[%c0_43, %c0_44, %c0_45], %51 {strides = array<i32>} : memref<2x16x32xf32, #tpu.memory_space<vmem>>, vector<2x16x32xf32>,
    %cst_46 = arith.constant dense<0.000000e+00> : vector<2x32xf32>
    %53 = vector.multi_reduction <add>, %51, %cst_46 [1] : vector<2x16x32xf32> to vector<2x32xf32>
    %cst_47 = arith.constant 6.250000e-02 : f32
    %54 = vector.broadcast %cst_47 : f32 to vector<2x32xf32>
    %55 = arith.mulf %53, %54 : vector<2x32xf32>
    %c0_48 = arith.constant 0 : index
    %c0_49 = arith.constant 0 : index
    %56 = vector.load %arg16[%c0_48, %c0_49] : memref<32x32xf32, #tpu.memory_space<vmem>>, vector<32x32xf32>
    %cst_50 = arith.constant dense<0.000000e+00> : vector<2x32xf32>
    %57 = tpu.matmul %55, %56, %cst_50 {dimension_numbers = #tpu.dot_dimension_numbers<[1], [0], [0], [1], [0, 0, 1, 1], [], []>} : vector<2x32xf32>, vector<32x32xf32>, vector<2x32xf32> -> vector<2x32xf32>
    %c0_51 = arith.constant 0 : index
    %c0_52 = arith.constant 0 : index
    %58 = vector.load %arg17[%c0_51, %c0_52] : memref<1x32xf32, #tpu.memory_space<vmem>>, vector<1x32xf32>
    %59 = vector.broadcast %58 : vector<1x32xf32> to vector<2x32xf32>
    %60 = arith.addf %57, %59 : vector<2x32xf32>
    %cst_53 = arith.constant 0.000000e+00 : f32
    %61 = vector.broadcast %cst_53 : f32 to vector<2x32xf32>
    %62 = arith.maximumf %60, %61 : vector<2x32xf32>
    %c0_54 = arith.constant 0 : index
    %c0_55 = arith.constant 0 : index
    %63 = vector.load %arg18[%c0_54, %c0_55] : memref<32x64xf32, #tpu.memory_space<vmem>>, vector<32x64xf32>
    %cst_56 = arith.constant dense<0.000000e+00> : vector<2x64xf32>
    %64 = tpu.matmul %62, %63, %cst_56 {dimension_numbers = #tpu.dot_dimension_numbers<[1], [0], [0], [1], [0, 0, 1, 1], [], []>} : vector<2x32xf32>, vector<32x64xf32>, vector<2x64xf32> -> vector<2x64xf32>
    %c0_57 = arith.constant 0 : index
    %c0_58 = arith.constant 0 : index
    %65 = vector.load %arg19[%c0_57, %c0_58] : memref<1x64xf32, #tpu.memory_space<vmem>>, vector<1x64xf32>
    %66 = vector.broadcast %65 : vector<1x64xf32> to vector<2x64xf32>
    %67 = arith.addf %64, %66 : vector<2x64xf32>
    %cst_59 = arith.constant 0.000000e+00 : f32
    %68 = vector.broadcast %cst_59 : f32 to vector<2x64xf32>
    %69 = arith.maximumf %67, %68 : vector<2x64xf32>
    %c0_60 = arith.constant 0 : index
    %c0_61 = arith.constant 0 : index
    %70 = vector.load %arg20[%c0_60, %c0_61] : memref<64x32xf32, #tpu.memory_space<vmem>>, vector<64x32xf32>
    %cst_62 = arith.constant dense<0.000000e+00> : vector<2x32xf32>
    %71 = tpu.matmul %69, %70, %cst_62 {dimension_numbers = #tpu.dot_dimension_numbers<[1], [0], [0], [1], [0, 0, 1, 1], [], []>} : vector<2x64xf32>, vector<64x32xf32>, vector<2x32xf32> -> vector<2x32xf32>
    %c0_63 = arith.constant 0 : index
    %c0_64 = arith.constant 0 : index
    %72 = vector.load %arg21[%c0_63, %c0_64] : memref<1x32xf32, #tpu.memory_space<vmem>>, vector<1x32xf32>
    %73 = vector.broadcast %72 : vector<1x32xf32> to vector<2x32xf32>
    %74 = arith.addf %71, %73 : vector<2x32xf32>
    %cst_65 = arith.constant 0.000000e+00 : f32
    %75 = vector.broadcast %cst_65 : f32 to vector<2x32xf32>
    %76 = arith.maximumf %74, %75 : vector<2x32xf32>
    %c0_66 = arith.constant 0 : index
    %c0_67 = arith.constant 0 : index
    %77 = vector.load %arg22[%c0_66, %c0_67] : memref<32x32xf32, #tpu.memory_space<vmem>>, vector<32x32xf32>
    %cst_68 = arith.constant dense<0.000000e+00> : vector<2x32xf32>
    %78 = tpu.matmul %76, %77, %cst_68 {dimension_numbers = #tpu.dot_dimension_numbers<[1], [0], [0], [1], [0, 0, 1, 1], [], []>} : vector<2x32xf32>, vector<32x32xf32>, vector<2x32xf32> -> vector<2x32xf32>
    %c0_69 = arith.constant 0 : index
    %c0_70 = arith.constant 0 : index
    %79 = vector.load %arg23[%c0_69, %c0_70] : memref<1x32xf32, #tpu.memory_space<vmem>>, vector<1x32xf32>
    %80 = vector.broadcast %79 : vector<1x32xf32> to vector<2x32xf32>
    %81 = arith.addf %78, %80 : vector<2x32xf32>
    %cst_71 = arith.constant 0.000000e+00 : f32
    %82 = vector.broadcast %cst_71 : f32 to vector<2x32xf32>
    %83 = arith.maximumf %81, %82 : vector<2x32xf32>
    %c0_72 = arith.constant 0 : index
    %c0_73 = arith.constant 0 : index
    %84 = vector.load %arg25[%c0_72, %c0_73] : memref<2x32xf32, #tpu.memory_space<vmem>>, vector<2x32xf32>
    tpu.vector_store %arg25[%c0_72, %c0_73], %83 {strides = array<i32>} : memref<2x32xf32, #tpu.memory_space<vmem>>, vector<2x32xf32>,
    return
  }
  func.func @transform_0(%arg0: i32) -> (i32, i32, i32) {
    %c0_i32 = arith.constant 0 : i32
    %c0_i32_0 = arith.constant 0 : i32
    %c0_i32_1 = arith.constant 0 : i32
    return %arg0, %c0_i32, %c0_i32_0 : i32, i32, i32
  }
  func.func @transform_1(%arg0: i32) -> (i32, i32) {
    %c0_i32 = arith.constant 0 : i32
    %c0_i32_0 = arith.constant 0 : i32
    %c0_i32_1 = arith.constant 0 : i32
    return %c0_i32, %c0_i32_0 : i32, i32
  }
  func.func @transform_2(%arg0: i32) -> (i32, i32) {
    %c0_i32 = arith.constant 0 : i32
    %c0_i32_0 = arith.constant 0 : i32
    %c0_i32_1 = arith.constant 0 : i32
    return %c0_i32, %c0_i32_0 : i32, i32
  }
  func.func @transform_3(%arg0: i32) -> (i32, i32) {
    %c0_i32 = arith.constant 0 : i32
    %c0_i32_0 = arith.constant 0 : i32
    %c0_i32_1 = arith.constant 0 : i32
    return %c0_i32, %c0_i32_0 : i32, i32
  }
  func.func @transform_4(%arg0: i32) -> (i32, i32) {
    %c0_i32 = arith.constant 0 : i32
    %c0_i32_0 = arith.constant 0 : i32
    %c0_i32_1 = arith.constant 0 : i32
    return %c0_i32, %c0_i32_0 : i32, i32
  }
  func.func @transform_5(%arg0: i32) -> (i32, i32) {
    %c0_i32 = arith.constant 0 : i32
    %c0_i32_0 = arith.constant 0 : i32
    %c0_i32_1 = arith.constant 0 : i32
    return %c0_i32, %c0_i32_0 : i32, i32
  }
  func.func @transform_6(%arg0: i32) -> (i32, i32) {
    %c0_i32 = arith.constant 0 : i32
    %c0_i32_0 = arith.constant 0 : i32
    %c0_i32_1 = arith.constant 0 : i32
    return %c0_i32, %c0_i32_0 : i32, i32
  }
  func.func @transform_7(%arg0: i32) -> (i32, i32) {
    %c0_i32 = arith.constant 0 : i32
    %c0_i32_0 = arith.constant 0 : i32
    %c0_i32_1 = arith.constant 0 : i32
    return %c0_i32, %c0_i32_0 : i32, i32
  }
  func.func @transform_8(%arg0: i32) -> (i32, i32) {
    %c0_i32 = arith.constant 0 : i32
    %c0_i32_0 = arith.constant 0 : i32
    %c0_i32_1 = arith.constant 0 : i32
    return %c0_i32, %c0_i32_0 : i32, i32
  }
  func.func @transform_9(%arg0: i32) -> (i32, i32) {
    %c0_i32 = arith.constant 0 : i32
    %c0_i32_0 = arith.constant 0 : i32
    %c0_i32_1 = arith.constant 0 : i32
    return %c0_i32, %c0_i32_0 : i32, i32
  }
  func.func @transform_10(%arg0: i32) -> (i32, i32) {
    %c0_i32 = arith.constant 0 : i32
    %c0_i32_0 = arith.constant 0 : i32
    %c0_i32_1 = arith.constant 0 : i32
    return %c0_i32, %c0_i32_0 : i32, i32
  }
  func.func @transform_11(%arg0: i32) -> (i32, i32) {
    %c0_i32 = arith.constant 0 : i32
    %c0_i32_0 = arith.constant 0 : i32
    %c0_i32_1 = arith.constant 0 : i32
    return %c0_i32, %c0_i32_0 : i32, i32
  }
  func.func @transform_12(%arg0: i32) -> (i32, i32) {
    %c0_i32 = arith.constant 0 : i32
    %c0_i32_0 = arith.constant 0 : i32
    %c0_i32_1 = arith.constant 0 : i32
    return %c0_i32, %c0_i32_0 : i32, i32
  }
  func.func @transform_13(%arg0: i32) -> (i32, i32) {
    %c0_i32 = arith.constant 0 : i32
    %c0_i32_0 = arith.constant 0 : i32
    %c0_i32_1 = arith.constant 0 : i32
    return %c0_i32, %c0_i32_0 : i32, i32
  }
  func.func @transform_14(%arg0: i32) -> (i32, i32) {
    %c0_i32 = arith.constant 0 : i32
    %c0_i32_0 = arith.constant 0 : i32
    %c0_i32_1 = arith.constant 0 : i32
    return %c0_i32, %c0_i32_0 : i32, i32
  }
  func.func @transform_15(%arg0: i32) -> (i32, i32) {
    %c0_i32 = arith.constant 0 : i32
    %c0_i32_0 = arith.constant 0 : i32
    %c0_i32_1 = arith.constant 0 : i32
    return %c0_i32, %c0_i32_0 : i32, i32
  }
  func.func @transform_16(%arg0: i32) -> (i32, i32) {
    %c0_i32 = arith.constant 0 : i32
    %c0_i32_0 = arith.constant 0 : i32
    %c0_i32_1 = arith.constant 0 : i32
    return %c0_i32, %c0_i32_0 : i32, i32
  }
  func.func @transform_17(%arg0: i32) -> (i32, i32) {
    %c0_i32 = arith.constant 0 : i32
    %c0_i32_0 = arith.constant 0 : i32
    %c0_i32_1 = arith.constant 0 : i32
    return %c0_i32, %c0_i32_0 : i32, i32
  }
  func.func @transform_18(%arg0: i32) -> (i32, i32) {
    %c0_i32 = arith.constant 0 : i32
    %c0_i32_0 = arith.constant 0 : i32
    %c0_i32_1 = arith.constant 0 : i32
    return %c0_i32, %c0_i32_0 : i32, i32
  }
  func.func @transform_19(%arg0: i32) -> (i32, i32) {
    %c0_i32 = arith.constant 0 : i32
    %c0_i32_0 = arith.constant 0 : i32
    %c0_i32_1 = arith.constant 0 : i32
    return %c0_i32, %c0_i32_0 : i32, i32
  }
  func.func @transform_20(%arg0: i32) -> (i32, i32) {
    %c0_i32 = arith.constant 0 : i32
    %c0_i32_0 = arith.constant 0 : i32
    %c0_i32_1 = arith.constant 0 : i32
    return %c0_i32, %c0_i32_0 : i32, i32
  }
  func.func @transform_21(%arg0: i32) -> (i32, i32) {
    %c0_i32 = arith.constant 0 : i32
    %c0_i32_0 = arith.constant 0 : i32
    %c0_i32_1 = arith.constant 0 : i32
    return %c0_i32, %c0_i32_0 : i32, i32
  }
  func.func @transform_22(%arg0: i32) -> (i32, i32) {
    %c0_i32 = arith.constant 0 : i32
    %c0_i32_0 = arith.constant 0 : i32
    %c0_i32_1 = arith.constant 0 : i32
    return %c0_i32, %c0_i32_0 : i32, i32
  }
  func.func @transform_23(%arg0: i32) -> (i32, i32, i32) {
    %c0_i32 = arith.constant 0 : i32
    %c0_i32_0 = arith.constant 0 : i32
    %c0_i32_1 = arith.constant 0 : i32
    return %arg0, %c0_i32, %c0_i32_0 : i32, i32, i32
  }
  func.func @transform_24(%arg0: i32) -> (i32, i32) {
    %c0_i32 = arith.constant 0 : i32
    %c0_i32_0 = arith.constant 0 : i32
    return %arg0, %c0_i32 : i32, i32
  }
}

</mosaic_0001>

<bundles_post_ra>
// kernel: tpu_custom_call.1
= control target key start
LH: loop header
LB: loop body
LE: loop exit
PB: predicated region body
PF: predicated region fallthrough
CT: control target
= control target key end

     0   :  { %s1267_s0 = inlined_call_operand.vmem [shape: f32[2,16,4], index: 0, kind: input, shape index: {}]   ;;  %s1268_s1 = inlined_call_operand.vmem [shape: f32[4,32], index: 1, kind: input, shape index: {}]   ;;  %s1269_s2 = inlined_call_operand.vmem [shape: f32[1,32], index: 2, kind: input, shape index: {}]   ;;  %s1270_s3 = inlined_call_operand.vmem [shape: f32[32,32], index: 3, kind: input, shape index: {}]   ;;  %s1271_s4 = inlined_call_operand.vmem [shape: f32[1,32], index: 4, kind: input, shape index: {}]   ;;  %s1272_s5 = inlined_call_operand.vmem [shape: f32[32,32], index: 5, kind: input, shape index: {}]   ;;  %s1273_s6 = inlined_call_operand.vmem [shape: f32[1,32], index: 6, kind: input, shape index: {}]   ;;  %s1274_s7 = inlined_call_operand.vmem [shape: f32[32,64], index: 7, kind: input, shape index: {}]   ;;  %s1275_s8 = inlined_call_operand.vmem [shape: f32[1,64], index: 8, kind: input, shape index: {}]   ;;  %s1276_s9 = inlined_call_operand.vmem [shape: f32[64,64], index: 9, kind: input, shape index: {}]   ;;  %s1277_s10 = inlined_call_operand.vmem [shape: f32[1,64], index: 10, kind: input, shape index: {}]   ;;  %s1278_s11 = inlined_call_operand.vmem [shape: f32[64,64], index: 11, kind: input, shape index: {}]   ;;  %s1279_s12 = inlined_call_operand.vmem [shape: f32[1,64], index: 12, kind: input, shape index: {}]   ;;  %s1280_s13 = inlined_call_operand.vmem [shape: f32[64,32], index: 13, kind: input, shape index: {}]   ;;  %s1281_s14 = inlined_call_operand.vmem [shape: f32[1,32], index: 14, kind: input, shape index: {}]   ;;  %s1282_s15 = inlined_call_operand.hbm [shape: f32[32,32], index: 15, kind: input, shape index: {}]   ;;  %s1283_s16 = inlined_call_operand.vmem [shape: f32[1,32], index: 16, kind: input, shape index: {}]   ;;  %s1284_s17 = inlined_call_operand.hbm [shape: f32[32,64], index: 17, kind: input, shape index: {}]   ;;  %s1285_s18 = inlined_call_operand.vmem [shape: f32[1,64], index: 18, kind: input, shape index: {}]   ;;  %s1286_s19 = inlined_call_operand.vmem [shape: f32[64,32], index: 19, kind: input, shape index: {}]   ;;  %s1287_s20 = inlined_call_operand.vmem [shape: f32[1,32], index: 20, kind: input, shape index: {}]   ;;  %s1288_s21 = inlined_call_operand.hbm [shape: f32[32,32], index: 21, kind: input, shape index: {}]   ;;  %s1289_s22 = inlined_call_operand.vmem [shape: f32[1,32], index: 22, kind: input, shape index: {}]   ;;  %s1290_s23 = inlined_call_operand.hbm [shape: f32[2,16,32], index: 23, kind: output, shape index: {0}]   ;;  %s1291_s24 = inlined_call_operand.hbm [shape: f32[2,32], index: 24, kind: output, shape index: {1}]  }
   0x1   :  { %1296 = sst [smem:[#allocation15_spill]] %s1267_s0 }
   0x2   :  { %1297 = sst [smem:[#allocation16_spill]] %s1268_s1 }
   0x3   :  { %1298 = sst [smem:[#allocation17_spill]] %s1269_s2 }
   0x4   :  { %1299 = sst [smem:[#allocation18_spill]] %s1270_s3 }
   0x5   :  { %1300 = sst [smem:[#allocation19_spill]] %s1271_s4 }
   0x6   :  { %1301 = sst [smem:[#allocation20_spill]] %s1272_s5 }
   0x7   :  { %1302 = sst [smem:[#allocation21_spill]] %s1273_s6 }
   0x8   :  { %1303 = sst [smem:[#allocation22_spill]] %s1274_s7 }
   0x9   :  { %1304 = sst [smem:[#allocation23_spill]] %s1275_s8 }
   0xa   :  { %30 = vsyncpa [#allocation3], 0 }
   0xb   :  { %31 = vsyncpa [#allocation6], 0 }
   0xc   :  { %32 = vsyncpa [#allocation4], 0 }
   0xd   :  { %33 = vsyncpa [#allocation10], 0  ;;  %s83_s27 = sshll.u32 %s1284_s17, 4  ;;  %s892_s28 = smov [#allocation5]   ;;  %s84_s27 = int_to_ptr.hbm [resolvable:$true] %s83_s27 }
   0xe   :  { %s85_s6 = sshll.u32 %s892_s28, 4  ;;  %s68_s0 = sshll.u32 %s1282_s15, 4  ;;  %s86_s6 = int_to_ptr.vmem [resolvable:$true] %s85_s6  ;;  %s69_s0 = int_to_ptr.hbm [resolvable:$true] %s68_s0 }
   0xf   :  { %s893_s7 = smov 128   ;;  %s894_s30 = smov 8  }
  0x10   :  { %91 = dma.hbm_to_vmem [thread:$0]  %s84_s27, 512, %s86_s6, [#allocation6], %s893_s7, %s893_s7, %s894_s30  }
  0x11   :  { %s895_s3 = smov [#allocation2]   ;;  %s102_s17 = sshll.u32 %s1288_s21, 4  ;;  %s103_s17 = int_to_ptr.hbm [resolvable:$true] %s102_s17 }
  0x12   :  { %s70_s25 = sshll.u32 %s895_s3, 4  ;;  %s896_s15 = smov [#allocation7]   ;;  %s71_s25 = int_to_ptr.vmem [resolvable:$true] %s70_s25 }
  0x13   :  { %76 = dma.hbm_to_vmem [thread:$0]  %s69_s0, 512, %s71_s25, [#allocation3], %s893_s7, %s893_s7, %s894_s30  }
  0x14   :  { %s104_s1 = sshll.u32 %s896_s15, 4  ;;  %s105_s1 = int_to_ptr.vmem [resolvable:$true] %s104_s1 }
  0x15   :  { %110 = dma.hbm_to_vmem [thread:$0]  %s103_s17, 512, %s105_s1, [#allocation6], %s893_s7, %s893_s7, %s894_s30  }
  0x16   :  { %884 = dma.done.wait [#allocation3], 512  }
  0x17   :  { %885 = vsyncadd [#allocation3], 4294966784 }
  0x18   :  { %886 = dma.done.wait [#allocation6], 1024  }
  0x19   :  { %887 = vsyncadd [#allocation6], 4294966272  ;;  %vm147_vm0 = vcmask 1043456   ;;  %vm134_vm1 = vcmask 31744   ;;  %s1305_s26 = sld [smem:[#allocation16_spill]]  ;;  %vm192_vm2 = vcmask 261120  }
  0x1a   :  { %s1306_s6 = sld [smem:[#allocation15_spill]]  ;;  %v351_v44 = vld [vmem:[%s1276_s9 + $0x38] sm:$0xff]  ;;  %v350_v45 = vld [vmem:[%s1276_s9 + $0x30] sm:$0xff]  ;;  %v349_v46 = vld [vmem:[%s1276_s9 + $0x28] sm:$0xff]  ;;  %vm356_vm3 = vcmask 523264   ;;  %vm550_vm4 = vcmask 1041409  }
  0x1b   :  { %s1307_s0 = sld [smem:[#allocation18_spill]]  ;;  %v348_v49 = vld [vmem:[%s1276_s9 + $0x20] sm:$0xff]  ;;  %v347_v51 = vld [vmem:[%s1276_s9 + $0x18] sm:$0xff]  ;;  %v346_v52 = vld [vmem:[%s1276_s9 + $0x10] sm:$0xff]  ;;  %vm675_vm5 = vcmask 254976  }
  0x1c   :  { %s1308_s3 = sld [smem:[#allocation17_spill]]  ;;  %v345_v53 = vld [vmem:[%s1276_s9 + $0x8] sm:$0xff]  ;;  %v344_v63 = vld [vmem:[%s1276_s9] sm:$0xff]  ;;  %s697_s9 = sshll.u32 %s1291_s24, 4  ;;  %s698_s9 = int_to_ptr.hbm [resolvable:$true] %s697_s9 }
  0x1d   :  { %s1309_s8 = sld [smem:[#allocation20_spill]] }
  0x1e   :  { %s1310_s27 = sld [smem:[#allocation19_spill]] }
  0x1f   :  { %v129_v0 = vld [vmem:[%s1305_s26] sm:$0xf]  ;;  %s1311_s29 = sld [smem:[#allocation22_spill]] }
  0x20   :  { %v125_v1 = vld [vmem:[%s1306_s6] sm:$0xff]  ;;  %713 = vmatpush.msk.msra.mxu0 %vm147_vm0, %v129_v0  ;;  %v126_v3 = vld [vmem:[%s1306_s6 + $0x8] sm:$0xff]  ;;  %v127_v4 = vld [vmem:[%s1306_s6 + $0x10] sm:$0xff]  ;;  %s1312_s1 = sld [smem:[#allocation21_spill]] }
  0x21   :  { %v187_v2 = vld [vmem:[%s1307_s0 + $0x18] sm:$0xff]  ;;  %714 = vmatmul.msk.f32.vlgmr.msra.gmra.mxu0 %vm134_vm1, %v125_v1  ;;  %v186_v6 = vld [vmem:[%s1307_s0 + $0x10] sm:$0xff]  ;;  %v185_v7 = vld [vmem:[%s1307_s0 + $0x8] sm:$0xff]  ;;  %s1313_s26 = sld [smem:[#allocation23_spill]] }
  0x22   :  { %217 = vmatpush.msra.mxu1 %v187_v2  ;;  %v128_v5 = vld [vmem:[%s1306_s6 + $0x18] sm:$0xff]  ;;  %v184_v8 = vld [vmem:[%s1307_s0] sm:$0xff]  ;;  %377 = vmatpush.msrb.mxu0 %v351_v44  ;;  %v408_v2 = vld [vmem:[%s1278_s11 + $0x30] sm:$0xff] }
  0x23   :  { %v753_v9 = vld [vmem:[%s1308_s3] ss:$0 sm:$0xff]  ;;  %v241_v10 = vld [vmem:[%s1309_s8 + $0x18] sm:$0xff]  ;;  %v240_v23 = vld [vmem:[%s1309_s8 + $0x10] sm:$0xff] }
  0x24   :  { %218 = vmatpush.msra.mxu1 %v186_v6  ;;  %270 = vmatpush.msra.mxu2 %v241_v10  ;;  %v239_v24 = vld [vmem:[%s1309_s8 + $0x8] sm:$0xff]  ;;  %v238_v25 = vld [vmem:[%s1309_s8] sm:$0xff]  ;;  %v409_v1 = vld [vmem:[%s1278_s11 + $0x38] sm:$0xff] }
  0x25   :  { %v754_v26 = vld [vmem:[%s1310_s27] ss:$0 sm:$0xff]  ;;  %v294_v27 = vld [vmem:[%s1311_s29 + $0x18] sm:$0xff]  ;;  %v293_v40 = vld [vmem:[%s1311_s29 + $0x10] sm:$0xff]  ;;  %378 = vmatpush.msrb.mxu0 %v350_v45  ;;  %s897_s27 = smov [#allocation8]  }
  0x26   :  { %219 = vmatpush.msra.mxu1 %v185_v7  ;;  %271 = vmatpush.msra.mxu2 %v240_v23  ;;  %v292_v41 = vld [vmem:[%s1311_s29 + $0x8] sm:$0xff]  ;;  %v291_v42 = vld [vmem:[%s1311_s29] sm:$0xff]  ;;  %v465_v23 = vld [vmem:[%s1280_s13 + $0x30] sm:$0xff] }
  0x27   :  { %323 = vmatpush.msra.mxu3 %v294_v27  ;;  %v755_v43 = vld [vmem:[%s1312_s1] ss:$0 sm:$0xff]  ;;  %379 = vmatpush.msrb.mxu0 %v349_v46  ;;  %v403_v10 = vld [vmem:[%s1278_s11 + $0x8] sm:$0xff] }
  0x28   :  { %220 = vmatpush.msra.mxu1 %v184_v8  ;;  %272 = vmatpush.msra.mxu2 %v239_v24  ;;  %v756_v0 = vld [vmem:[%s1313_s26] ss:$0 sm:$0xff]  ;;  %v405_v8 = vld [vmem:[%s1278_s11 + $0x18] sm:$0xff]  ;;  %v464_v24 = vld [vmem:[%s1280_s13 + $0x28] sm:$0xff] }
  0x29   :  { %715 = vmatmul.msk.f32.gmra.mxu0 %vm134_vm1, %v126_v3  ;;  %324 = vmatpush.msra.mxu3 %v293_v40  ;;  %v407_v3 = vld [vmem:[%s1278_s11 + $0x28] sm:$0xff]  ;;  %v406_v6 = vld [vmem:[%s1278_s11 + $0x20] sm:$0xff] }
  0x2a   :  { %273 = vmatpush.msra.mxu2 %v238_v25  ;;  %380 = vmatpush.msrb.mxu0 %v348_v49  ;;  %v463_v27 = vld [vmem:[%s1280_s13 + $0x20] sm:$0xff] }
  0x2b   :  { %325 = vmatpush.msra.mxu3 %v292_v41  ;;  %434 = vmatpush.msrb.mxu1 %v409_v1  ;;  %v459_v41 = vld [vmem:[%s1280_s13] sm:$0xff] }
  0x2c   :  { %381 = vmatpush.msrb.mxu0 %v347_v51 }
  0x2d   :  { %326 = vmatpush.msra.mxu3 %v291_v42  ;;  %435 = vmatpush.msrb.mxu1 %v408_v2  ;;  %v758_v42 = vld [vmem:[%s1279_s12] ss:$0 sm:$0xff] }
  0x2e   :  { %382 = vmatpush.msrb.mxu0 %v346_v52 }
  0x2f   :  { %436 = vmatpush.msrb.mxu1 %v407_v3 }
  0x30   :  { %383 = vmatpush.msrb.mxu0 %v345_v53 }
  0x31   :  { %716 = vmatmul.msk.f32.gmra.mxu0 %vm134_vm1, %v127_v4  ;;  %437 = vmatpush.msrb.mxu1 %v406_v6 }
  0x32   :  { %384 = vmatpush.msrb.mxu0 %v344_v63  ;;  %v540_v63 = vld [vmem:[#allocation2] sm:$0xff] }
  0x33   :  { %438 = vmatpush.msrb.mxu1 %v405_v8 }
  0x39   :  { %717 = vmatmul.msk.f32.gmra.mxu0 %vm134_vm1, %v128_v5 }
  0x9e   :  { %v168_v11 = vpop.f32.mrf.mxu0 }
  0x9f   :  { %v169_v12 = vadd.f32 %v753_v9, %v168_v11 }
  0xa1   :  { %v180_v13 = vmax.f32 %v169_v12, 0.0 }
  0xa3   :  { %718 = vmatmul.msk.f32.vlgmr.msra.gmra.mxu1 %vm192_vm2, %v180_v13 }
  0xa6   :  { %v171_v14 = vpop.f32.mrf.mxu0 }
  0xa7   :  { %v172_v15 = vadd.f32 %v753_v9, %v171_v14 }
  0xa9   :  { %v181_v16 = vmax.f32 %v172_v15, 0.0 }
  0xab   :  { %719 = vmatmul.msk.f32.gmra.mxu1 %vm192_vm2, %v181_v16 }
  0xae   :  { %v174_v17 = vpop.f32.mrf.mxu0 }
  0xaf   :  { %v175_v18 = vadd.f32 %v753_v9, %v174_v17 }
  0xb1   :  { %v182_v19 = vmax.f32 %v175_v18, 0.0 }
  0xb3   :  { %720 = vmatmul.msk.f32.gmra.mxu1 %vm192_vm2, %v182_v19 }
  0xb6   :  { %v177_v20 = vpop.f32.mrf.mxu0 }
  0xb7   :  { %v178_v21 = vadd.f32 %v753_v9, %v177_v20  ;;  %v404_v9 = vld [vmem:[%s1278_s11 + $0x10] sm:$0xff]  ;;  %v402_v20 = vld [vmem:[%s1278_s11] sm:$0xff] }
  0xb8   :  { %439 = vmatpush.msrb.mxu1 %v404_v9 }
  0xb9   :  { %v183_v22 = vmax.f32 %v178_v21, 0.0  ;;  %v757_v21 = vld [vmem:[%s1277_s10] ss:$0 sm:$0xff] }
  0xba   :  { %440 = vmatpush.msrb.mxu1 %v403_v10 }
  0xbb   :  { %721 = vmatmul.msk.f32.gmra.mxu1 %vm192_vm2, %v183_v22  ;;  %v466_v22 = vld [vmem:[%s1280_s13 + $0x38] sm:$0xff] }
  0xbc   :  { %441 = vmatpush.msrb.mxu1 %v402_v20  ;;  %491 = vmatpush.msrb.mxu2 %v466_v22 }
  0xbe   :  { %492 = vmatpush.msrb.mxu2 %v465_v23 }
  0xc0   :  { %493 = vmatpush.msrb.mxu2 %v464_v24 }
  0xc2   :  { %494 = vmatpush.msrb.mxu2 %v463_v27 }
 0x120   :  { %v222_v28 = vpop.f32.mrf.mxu1 }
 0x121   :  { %v223_v29 = vadd.f32 %v754_v26, %v222_v28 }
 0x123   :  { %v234_v30 = vmax.f32 %v223_v29, 0.0  ;;  %v462_v29 = vld [vmem:[%s1280_s13 + $0x18] sm:$0xff] }
 0x124   :  { %495 = vmatpush.msrb.mxu2 %v462_v29 }
 0x125   :  { %722 = vmatmul.msk.f32.vlgmr.msra.gmra.mxu2 %vm192_vm2, %v234_v30  ;;  %v461_v30 = vld [vmem:[%s1280_s13 + $0x10] sm:$0xff] }
 0x126   :  { %496 = vmatpush.msrb.mxu2 %v461_v30 }
 0x128   :  { %v225_v31 = vpop.f32.mrf.mxu1 }
 0x129   :  { %v226_v32 = vadd.f32 %v754_v26, %v225_v31  ;;  %v460_v31 = vld [vmem:[%s1280_s13 + $0x8] sm:$0xff] }
 0x12a   :  { %497 = vmatpush.msrb.mxu2 %v460_v31  ;;  %v576_v31 = vld [vmem:[#allocation5 + $0x8] sm:$0xff] }
 0x12b   :  { %v235_v33 = vmax.f32 %v226_v32, 0.0 }
 0x12c   :  { %498 = vmatpush.msrb.mxu2 %v459_v41 }
 0x12d   :  { %723 = vmatmul.msk.f32.gmra.mxu2 %vm192_vm2, %v235_v33 }
 0x130   :  { %v228_v34 = vpop.f32.mrf.mxu1 }
 0x131   :  { %v229_v35 = vadd.f32 %v754_v26, %v228_v34 }
 0x133   :  { %v236_v36 = vmax.f32 %v229_v35, 0.0 }
 0x135   :  { %724 = vmatmul.msk.f32.gmra.mxu2 %vm192_vm2, %v236_v36 }
 0x138   :  { %v231_v37 = vpop.f32.mrf.mxu1 }
 0x139   :  { %v232_v38 = vadd.f32 %v754_v26, %v231_v37 }
 0x13b   :  { %v237_v39 = vmax.f32 %v232_v38, 0.0 }
 0x13d   :  { %725 = vmatmul.msk.f32.gmra.mxu2 %vm192_vm2, %v237_v39 }
 0x1a8   :  { %v275_v47 = vpop.f32.mrf.mxu2 }
 0x1a9   :  { %v276_v48 = vadd.f32 %v755_v43, %v275_v47 }
 0x1ab   :  { %v287_v50 = vmax.f32 %v276_v48, 0.0 }
 0x1ad   :  { %726 = vmatmul.msk.f32.vlgmr.msra.gmra.mxu3 %vm192_vm2, %v287_v50 }
 0x1b0   :  { %v278_v54 = vpop.f32.mrf.mxu2 }
 0x1b1   :  { %v279_v55 = vadd.f32 %v755_v43, %v278_v54 }
 0x1b3   :  { %v288_v56 = vmax.f32 %v279_v55, 0.0  ;;  %v543_v55 = vld [vmem:[#allocation2 + $0x18] sm:$0xff] }
 0x1b4   :  { %566 = vmatpush.msrb.mxu3 %v543_v55 }
 0x1b5   :  { %727 = vmatmul.msk.f32.gmra.mxu3 %vm192_vm2, %v288_v56  ;;  %v542_v56 = vld [vmem:[#allocation2 + $0x10] sm:$0xff] }
 0x1b6   :  { %567 = vmatpush.msrb.mxu3 %v542_v56 }
 0x1b8   :  { %v281_v57 = vpop.f32.mrf.mxu2 }
 0x1b9   :  { %v282_v58 = vadd.f32 %v755_v43, %v281_v57  ;;  %v759_v57 = vld [vmem:[%s1281_s14] ss:$0 sm:$0xff]  ;;  %s683_s14 = sshll.u32 %s1290_s23, 4  ;;  %s684_s14 = int_to_ptr.hbm [resolvable:$true] %s683_s14 }
 0x1bb   :  { %v289_v59 = vmax.f32 %v282_v58, 0.0 }
 0x1bd   :  { %728 = vmatmul.msk.f32.gmra.mxu3 %vm192_vm2, %v289_v59 }
 0x1c0   :  { %v284_v60 = vpop.f32.mrf.mxu2 }
 0x1c1   :  { %v285_v61 = vadd.f32 %v755_v43, %v284_v60 }
 0x1c3   :  { %v290_v62 = vmax.f32 %v285_v61, 0.0 }
 0x1c5   :  { %729 = vmatmul.msk.f32.gmra.mxu3 %vm192_vm2, %v290_v62  ;;  %v541_v62 = vld [vmem:[#allocation2 + $0x8] sm:$0xff] }
 0x1c6   :  { %568 = vmatpush.msrb.mxu3 %v541_v62 }
 0x1c8   :  { %569 = vmatpush.msrb.mxu3 %v540_v63 }
 0x230   :  { %v328_v4 = vpop.f32.mrf.mxu3 }
 0x231   :  { %v329_v5 = vadd.f32 %v756_v0, %v328_v4  ;;  %v578_v4 = vld [vmem:[#allocation5 + $0x18] sm:$0xff] }
 0x232   :  { %598 = vmatpush.msra.mxu3 %v578_v4 }
 0x233   :  { %v340_v7 = vmax.f32 %v329_v5, 0.0  ;;  %v577_v5 = vld [vmem:[#allocation5 + $0x10] sm:$0xff] }
 0x234   :  { %599 = vmatpush.msra.mxu3 %v577_v5 }
 0x235   :  { %730 = vmatmul.msk.f32.vlgmr.msrb.gmra.mxu0 %vm356_vm3, %v340_v7 }
 0x236   :  { %600 = vmatpush.msra.mxu3 %v576_v31 }
 0x238   :  { %v331_v11 = vpop.f32.mrf.mxu3 }
 0x239   :  { %v332_v12 = vadd.f32 %v756_v0, %v331_v11 }
 0x23b   :  { %v341_v13 = vmax.f32 %v332_v12, 0.0 }
 0x23d   :  { %731 = vmatmul.msk.f32.gmra.mxu0 %vm356_vm3, %v341_v13 }
 0x240   :  { %v334_v14 = vpop.f32.mrf.mxu3 }
 0x241   :  { %v335_v15 = vadd.f32 %v756_v0, %v334_v14 }
 0x243   :  { %v342_v16 = vmax.f32 %v335_v15, 0.0 }
 0x245   :  { %732 = vmatmul.msk.f32.gmra.mxu0 %vm356_vm3, %v342_v16 }
 0x248   :  { %v337_v17 = vpop.f32.mrf.mxu3 }
 0x249   :  { %v338_v18 = vadd.f32 %v756_v0, %v337_v17 }
 0x24b   :  { %v343_v19 = vmax.f32 %v338_v18, 0.0 }
 0x24d   :  { %733 = vmatmul.msk.f32.gmra.mxu0 %vm356_vm3, %v343_v19 }
 0x2b2   :  { %v386_v25 = vpop.f32.mrf.mxu0 }
 0x2b3   :  { %v387_v26 = vadd.f32 %v757_v21, %v386_v25 }
 0x2b5   :  { %v398_v28 = vmax.f32 %v387_v26, 0.0 }
 0x2b7   :  { %734 = vmatmul.msk.f32.vlgmr.msrb.gmra.mxu1 %vm356_vm3, %v398_v28 }
 0x2ba   :  { %v389_v32 = vpop.f32.mrf.mxu0 }
 0x2bb   :  { %v390_v33 = vadd.f32 %v757_v21, %v389_v32  ;;  %v575_v32 = vld [vmem:[#allocation5] sm:$0xff] }
 0x2bc   :  { %601 = vmatpush.msra.mxu3 %v575_v32 }
 0x2bd   :  { %v399_v34 = vmax.f32 %v390_v33, 0.0  ;;  %v614_v33 = vld [vmem:[%s1286_s19 + $0x38] sm:$0xff] }
 0x2bf   :  { %735 = vmatmul.msk.f32.gmra.mxu1 %vm356_vm3, %v399_v34  ;;  %v613_v34 = vld [vmem:[%s1286_s19 + $0x30] sm:$0xff] }
 0x2c2   :  { %v392_v35 = vpop.f32.mrf.mxu0 }
 0x2c3   :  { %v393_v36 = vadd.f32 %v757_v21, %v392_v35  ;;  %v612_v35 = vld [vmem:[%s1286_s19 + $0x28] sm:$0xff] }
 0x2c5   :  { %v400_v37 = vmax.f32 %v393_v36, 0.0  ;;  %v611_v36 = vld [vmem:[%s1286_s19 + $0x20] sm:$0xff] }
 0x2c7   :  { %736 = vmatmul.msk.f32.gmra.mxu1 %vm356_vm3, %v400_v37  ;;  %v610_v37 = vld [vmem:[%s1286_s19 + $0x18] sm:$0xff] }
 0x2ca   :  { %v395_v38 = vpop.f32.mrf.mxu0 }
 0x2cb   :  { %v396_v39 = vadd.f32 %v757_v21, %v395_v38  ;;  %v760_v38 = vld [vmem:[%s1283_s16] ss:$0 sm:$0xff] }
 0x2cd   :  { %v401_v40 = vmax.f32 %v396_v39, 0.0 }
 0x2cf   :  { %737 = vmatmul.msk.f32.gmra.mxu1 %vm356_vm3, %v401_v40 }
 0x334   :  { %v443_v43 = vpop.f32.mrf.mxu1 }
 0x335   :  { %v444_v44 = vadd.f32 %v758_v42, %v443_v43  ;;  %v608_v43 = vld [vmem:[%s1286_s19 + $0x8] sm:$0xff] }
 0x337   :  { %v455_v45 = vmax.f32 %v444_v44, 0.0  ;;  %v607_v44 = vld [vmem:[%s1286_s19] sm:$0xff] }
 0x339   :  { %738 = vmatmul.msk.f32.vlgmr.msrb.gmra.mxu2 %vm356_vm3, %v455_v45  ;;  %v646_v45 = vld [vmem:[#allocation7 + $0x18] sm:$0xff] }
 0x33a   :  { %666 = vmatpush.msra.mxu0 %v646_v45 }
 0x33c   :  { %v446_v46 = vpop.f32.mrf.mxu1 }
 0x33d   :  { %v447_v47 = vadd.f32 %v758_v42, %v446_v46  ;;  %v645_v46 = vld [vmem:[#allocation7 + $0x10] sm:$0xff] }
 0x33e   :  { %667 = vmatpush.msra.mxu0 %v645_v46 }
 0x33f   :  { %v456_v48 = vmax.f32 %v447_v47, 0.0  ;;  %v644_v47 = vld [vmem:[#allocation7 + $0x8] sm:$0xff] }
 0x340   :  { %668 = vmatpush.msra.mxu0 %v644_v47 }
 0x341   :  { %739 = vmatmul.msk.f32.gmra.mxu2 %vm356_vm3, %v456_v48  ;;  %v643_v48 = vld [vmem:[#allocation7] sm:$0xff] }
 0x342   :  { %669 = vmatpush.msra.mxu0 %v643_v48 }
 0x344   :  { %v449_v49 = vpop.f32.mrf.mxu1 }
 0x345   :  { %v450_v50 = vadd.f32 %v758_v42, %v449_v49  ;;  %v761_v49 = vld [vmem:[%s1285_s18] ss:$0 sm:$0xff]  ;;  %s681_s18 = sshll.u32 %s897_s27, 4  ;;  %s682_s18 = int_to_ptr.vmem [resolvable:$true] %s681_s18 }
 0x347   :  { %v457_v51 = vmax.f32 %v450_v50, 0.0 }
 0x349   :  { %740 = vmatmul.msk.f32.gmra.mxu2 %vm356_vm3, %v457_v51 }
 0x34c   :  { %v452_v52 = vpop.f32.mrf.mxu1 }
 0x34d   :  { %v453_v53 = vadd.f32 %v758_v42, %v452_v52  ;;  %v609_v42 = vld [vmem:[%s1286_s19 + $0x10] sm:$0xff] }
 0x34f   :  { %v458_v54 = vmax.f32 %v453_v53, 0.0  ;;  %v762_v53 = vld [vmem:[%s1287_s20] ss:$0 sm:$0xff]  ;;  %s898_s20 = smov [#allocation9]  }
 0x350   :  { %s695_s29 = sshll.u32 %s898_s20, 4  ;;  %s696_s29 = int_to_ptr.vmem [resolvable:$true] %s695_s29 }
 0x351   :  { %741 = vmatmul.msk.f32.gmra.mxu2 %vm356_vm3, %v458_v54 }
 0x3bc   :  { %v500_v58 = vpop.f32.mrf.mxu2 }
 0x3bd   :  { %v501_v59 = vadd.f32 %v759_v57, %v500_v58 }
 0x3bf   :  { %v512_v60 = vmax.f32 %v501_v59, 0.0 }
 0x3c1   :  { %516 = vst.msk [vmem:[#allocation8] sm:$0xff] %vm192_vm2, %v512_v60  ;;  %v520_v3 = vsel %vm192_vm2, %v512_v60, 0.0 }
 0x3c4   :  { %v503_v61 = vpop.f32.mrf.mxu2 }
 0x3c5   :  { %v504_v0 = vadd.f32 %v759_v57, %v503_v61 }
 0x3c7   :  { %v513_v1 = vmax.f32 %v504_v0, 0.0 }
 0x3c9   :  { %517 = vst.msk [vmem:[#allocation8 + $0x8] sm:$0xff] %vm192_vm2, %v513_v1  ;;  %v521_v2 = vsel %vm192_vm2, %v513_v1, 0.0 }
 0x3ca   :  { %v522_v6 = vadd.f32 %v521_v2, %v520_v3 }
 0x3cc   :  { %v506_v7 = vpop.f32.mrf.mxu2  ;;  %v523_v10 = vrot.slane %v522_v6, 4 }
 0x3cd   :  { %v507_v8 = vadd.f32 %v759_v57, %v506_v7 }
 0x3ce   :  { %v524_v11 = vadd.f32 %v523_v10, %v522_v6 }
 0x3cf   :  { %v514_v9 = vmax.f32 %v507_v8, 0.0 }
 0x3d0   :  { %v525_v15 = vrot.slane %v524_v11, 2 }
 0x3d1   :  { %518 = vst.msk [vmem:[#allocation8 + $0x10] sm:$0xff] %vm192_vm2, %v514_v9  ;;  %v529_v16 = vsel %vm192_vm2, %v514_v9, 0.0 }
 0x3d2   :  { %v526_v19 = vadd.f32 %v525_v15, %v524_v11 }
 0x3d4   :  { %v509_v12 = vpop.f32.mrf.mxu2  ;;  %v527_v22 = vrot.slane %v526_v19, 1 }
 0x3d5   :  { %v510_v13 = vadd.f32 %v759_v57, %v509_v12  ;;  %v763_v57 = vld [vmem:[%s1289_s22] ss:$0 sm:$0xff] }
 0x3d6   :  { %v528_v26 = vadd.f32 %v527_v22, %v526_v19 }
 0x3d7   :  { %v515_v14 = vmax.f32 %v510_v13, 0.0 }
 0x3d8   :  { %v538_v28 = vmul.f32 0.0625, %v528_v26 }
 0x3d9   :  { %519 = vst.msk [vmem:[#allocation8 + $0x18] sm:$0xff] %vm192_vm2, %v515_v14  ;;  %v530_v17 = vsel %vm192_vm2, %v515_v14, 0.0 }
 0x3da   :  { %v531_v18 = vadd.f32 %v530_v17, %v529_v16  ;;  %689 = dma.vmem_to_hbm [thread:$0]  %s682_s18, 512, %s684_s14, [#allocation4], %s893_s7, %s893_s7, %s894_s30  }
 0x3dc   :  { %v532_v20 = vrot.slane %v531_v18, 4 }
 0x3de   :  { %v533_v21 = vadd.f32 %v532_v20, %v531_v18 }
 0x3e0   :  { %v534_v23 = vrot.slane %v533_v21, 2 }
 0x3e2   :  { %v535_v24 = vadd.f32 %v534_v23, %v533_v21 }
 0x3e4   :  { %v536_v25 = vrot.slane %v535_v24, 1 }
 0x3e6   :  { %v537_v27 = vadd.f32 %v536_v25, %v535_v24 }
 0x3e8   :  { %v539_v29 = vmul.f32 0.0625, %v537_v27 }
 0x3ea   :  { %v551_v30 = vsel %vm550_vm4, %v539_v29, %v538_v28 }
 0x3eb   :  { %742 = vmatmul.msk.f32.vlgmr.msrb.gmra.mxu3 %vm192_vm2, %v551_v30 }
 0x3ec   :  { %630 = vmatpush.msrb.mxu3 %v614_v33 }
 0x3ee   :  { %631 = vmatpush.msrb.mxu3 %v613_v34 }
 0x3f0   :  { %632 = vmatpush.msrb.mxu3 %v612_v35 }
 0x3f2   :  { %633 = vmatpush.msrb.mxu3 %v611_v36 }
 0x3f4   :  { %634 = vmatpush.msrb.mxu3 %v610_v37 }
 0x3f6   :  { %635 = vmatpush.msrb.mxu3 %v609_v42 }
 0x3f8   :  { %636 = vmatpush.msrb.mxu3 %v608_v43 }
 0x3fa   :  { %637 = vmatpush.msrb.mxu3 %v607_v44 }
 0x46e   :  { %v571_v39 = vpop.f32.mrf.mxu3 }
 0x46f   :  { %v572_v40 = vadd.f32 %v760_v38, %v571_v39 }
 0x471   :  { %v574_v41 = vmax.f32 %v572_v40, 0.0 }
 0x473   :  { %743 = vmatmul.msk.f32.vlgmr.msra.gmra.mxu3 %vm192_vm2, %v574_v41 }
 0x4f6   :  { %v603_v50 = vpop.f32.mrf.mxu3 }
 0x4f7   :  { %v604_v51 = vadd.f32 %v761_v49, %v603_v50 }
 0x4f9   :  { %v606_v52 = vmax.f32 %v604_v51, 0.0 }
 0x4fb   :  { %744 = vmatmul.msk.f32.vlgmr.msrb.gmra.mxu3 %vm356_vm3, %v606_v52 }
 0x57e   :  { %v639_v54 = vpop.f32.mrf.mxu3 }
 0x57f   :  { %v640_v55 = vadd.f32 %v762_v53, %v639_v54 }
 0x581   :  { %v642_v56 = vmax.f32 %v640_v55, 0.0 }
 0x583   :  { %745 = vmatmul.msk.f32.vlgmr.msra.gmra.mxu0 %vm192_vm2, %v642_v56 }
 0x600   :  { %v671_v58 = vpop.f32.mrf.mxu0 }
 0x601   :  { %v672_v59 = vadd.f32 %v763_v57, %v671_v58 }
 0x603   :  { %v674_v60 = vmax.f32 %v672_v59, 0.0 }
 0x605   :  { %676 = vst.msk [vmem:[#allocation9] sm:$0x3] %vm675_vm5, %v674_v60 }
 0x606   :  { %700 = dma.vmem_to_hbm [thread:$0]  %s696_s29, 32, %s698_s9, [#allocation10]  }
 0x607   :  { %888 = dma.done.wait [#allocation4], 512  }
 0x608   :  { %889 = vsyncadd [#allocation4], 4294966784 }
 0x609   :  { %890 = dma.done.wait [#allocation10], 32  }
 0x60a   :  { %891 = vsyncadd [#allocation10], 4294967264 }
 0x60b   :  { %709 = vsyncpa [#allocation3], 1 }
 0x60c   :  { %710 = vsyncpa [#allocation6], 1 }
 0x60d   :  { %711 = vsyncpa [#allocation4], 1 }
 0x60e   :  { %712 = vsyncpa [#allocation10], 1 }

</bundles_post_ra>
